<compile_context>
chip_gen: v6e
topology: v6e:2x2x1
jax: 0.10.0
libtpu: 0.0.40
codegen_flags: <defaults>
</compile_context>

<pallas_src>
import functools

import jax
import jax.numpy as jnp
from jax.experimental import pallas as pl
from jax.experimental.pallas import tpu as pltpu


# ----------------------------------------------------------------------------
# helpers
# ----------------------------------------------------------------------------
def _ru(x, m):
    return ((x + m - 1) // m) * m


_ROW_CACHE = {}


def _const_rows(n):
    """(ones, zeros) rows of shape (1, n) used as placeholder scale/shift."""
    if n not in _ROW_CACHE:
        _ROW_CACHE[n] = (jnp.ones((1, n), jnp.float32),
                         jnp.zeros((1, n), jnp.float32))
    return _ROW_CACHE[n]


def _epilogue(y, bias, scale, shift, mode):
    """Fused conv epilogue (fp32)."""
    y = y + bias
    if mode == "bn_relu":        # conv -> BN -> ReLU
        y = jnp.maximum(y * scale + shift, 0.0)
    elif mode == "relu_bn":      # conv -> ReLU -> BN   (MLP fc2 + norm2)
        y = jnp.maximum(y, 0.0) * scale + shift
    elif mode == "relu":
        y = jnp.maximum(y, 0.0)
    return y


# ----------------------------------------------------------------------------
# Pallas kernel 1: 1x1 conv matmul + fused bias / BN / ReLU / residual
# ----------------------------------------------------------------------------
def _mm_kernel(mode, has_res, *refs):
    if has_res:
        a_ref, w_ref, b_ref, s_ref, t_ref, r_ref, o_ref = refs
    else:
        a_ref, w_ref, b_ref, s_ref, t_ref, o_ref = refs
    y = jnp.dot(a_ref[...], w_ref[...], preferred_element_type=jnp.float32)
    y = _epilogue(y, b_ref[...], s_ref[...], t_ref[...], mode)
    if has_res:
        y = y + r_ref[...].astype(jnp.float32)
    o_ref[...] = y.astype(o_ref.dtype)


@functools.partial(jax.jit, static_argnames=("mode",))
def _matmul_fused(x4, w, bias, scale, shift, res4, mode):
    """x4:(B,H,W,C) bf16 @ w:(C,O) bf16 -> (B,H,W,O) bf16, fused epilogue."""
    B, H, W, C = x4.shape
    O = w.shape[-1]
    M = B * H * W
    a = x4.reshape(M, C)
    res = res4.reshape(M, O) if res4 is not None else None

    TM = min(512, _ru(M, 8))
    Mp = _ru(M, TM)
    if Mp != M:
        a = jnp.pad(a, ((0, Mp - M), (0, 0)))
        if res is not None:
            res = jnp.pad(res, ((0, Mp - M), (0, 0)))

    has_res = res is not None
    in_specs = [
        pl.BlockSpec((TM, C), lambda i: (i, 0)),
        pl.BlockSpec((C, O), lambda i: (0, 0)),
        pl.BlockSpec((1, O), lambda i: (0, 0)),
        pl.BlockSpec((1, O), lambda i: (0, 0)),
        pl.BlockSpec((1, O), lambda i: (0, 0)),
    ]
    args = [a, w, bias, scale, shift]
    if has_res:
        in_specs.append(pl.BlockSpec((TM, O), lambda i: (i, 0)))
        args.append(res)

    out = pl.pallas_call(
        functools.partial(_mm_kernel, mode, has_res),
        out_shape=jax.ShapeDtypeStruct((Mp, O), jnp.bfloat16),
        grid_spec=pltpu.PrefetchScalarGridSpec(
            num_scalar_prefetch=0,
            grid=(Mp // TM,),
            in_specs=in_specs,
            out_specs=pl.BlockSpec((TM, O), lambda i: (i, 0)),
        ),
        compiler_params=pltpu.CompilerParams(
            dimension_semantics=("parallel",)),
    )(*args)
    if Mp != M:
        out = out[:M]
    return out.reshape(B, H, W, O)


# ----------------------------------------------------------------------------
# Pallas kernel 2: dense kxk conv via flat row-shift tap accumulation
# (no im2col in HBM, no k-way stack; one (H*Wp, C)x(C, O) MXU dot per tap)
# ----------------------------------------------------------------------------
def _convk_kernel(k, dil, Wp, rows, mode, x_ref, w_ref, b_ref, s_ref, t_ref,
                  o_ref):
    O = o_ref.shape[-1]
    acc = jnp.zeros((rows, O), jnp.float32)
    for ky in range(k):
        for kx in range(k):
            off = ky * dil * Wp + kx * dil                 # static flat shift
            a = x_ref[0, off:off + rows, :]                # (rows, C) bf16
            acc = acc + jnp.dot(a, w_ref[ky * k + kx],
                                preferred_element_type=jnp.float32)
    y = _epilogue(acc, b_ref[...], s_ref[...], t_ref[...], mode)
    o_ref[0, :, :] = y.astype(o_ref.dtype)


@functools.partial(jax.jit, static_argnames=("k", "dil", "mode"))
def _convk_fused(x, w_flat, bias, scale, shift, res, k, dil, mode):
    """x:(B,H,W,C) bf16; w_flat:(k*k,C,O) bf16 -> (B,H,W,O) bf16."""
    B, H, W, C = x.shape
    O = w_flat.shape[-1]
    pad = dil * (k - 1) // 2
    Wp = W + dil * (k - 1)
    rows = H * Wp
    # one extra zero row at the bottom keeps every tap's flat slice in bounds
    xp = jnp.pad(x, ((0, 0), (pad, pad + 1), (pad, pad), (0, 0)))
    R = (H + dil * (k - 1) + 1) * Wp
    xf = xp.reshape(B, R, C)

    out = pl.pallas_call(
        functools.partial(_convk_kernel, k, dil, Wp, rows, mode),
        out_shape=jax.ShapeDtypeStruct((B, rows, O), jnp.bfloat16),
        grid_spec=pltpu.PrefetchScalarGridSpec(
            num_scalar_prefetch=0,
            grid=(B,),
            in_specs=[
                pl.BlockSpec((1, R, C), lambda b: (b, 0, 0)),
                pl.BlockSpec((k * k, C, O), lambda b: (0, 0, 0)),
                pl.BlockSpec((1, O), lambda b: (0, 0)),
                pl.BlockSpec((1, O), lambda b: (0, 0)),
                pl.BlockSpec((1, O), lambda b: (0, 0)),
            ],
            out_specs=pl.BlockSpec((1, rows, O), lambda b: (b, 0, 0)),
        ),
        compiler_params=pltpu.CompilerParams(
            dimension_semantics=("parallel",)),
    )(xf, w_flat, bias, scale, shift)

    out = out.reshape(B, H, Wp, O)[:, :, :W, :]            # drop width halo
    if res is not None:
        out = out + res                                    # fuses with slice
    return out


# ----------------------------------------------------------------------------
# Pallas kernel 3: depthwise kxk conv (flat row-shift taps, VPU)
# ----------------------------------------------------------------------------
def _dwk_kernel(k, dil, Wp, rows, x_ref, w_ref, b_ref, o_ref):
    C = o_ref.shape[-1]
    acc = jnp.zeros((rows, C), jnp.float32)
    for ky in range(k):
        for kx in range(k):
            off = ky * dil * Wp + kx * dil
            a = x_ref[0, off:off + rows, :].astype(jnp.float32)
            acc = acc + a * w_ref[ky * k + kx]
    o_ref[0, :, :] = (acc + b_ref[...]).astype(o_ref.dtype)


@functools.partial(jax.jit, static_argnames=("k", "dil"))
def _dwconv_fused(x, w_dw, b_dw, k, dil):
    """x:(B,H,W,C) bf16; w_dw:(k*k,1,C) f32; b_dw:(1,C) -> (B,H,W,C) bf16."""
    B, H, W, C = x.shape
    pad = dil * (k - 1) // 2
    Wp = W + dil * (k - 1)
    rows = H * Wp
    xp = jnp.pad(x, ((0, 0), (pad, pad + 1), (pad, pad), (0, 0)))
    R = (H + dil * (k - 1) + 1) * Wp
    xf = xp.reshape(B, R, C)

    out = pl.pallas_call(
        functools.partial(_dwk_kernel, k, dil, Wp, rows),
        out_shape=jax.ShapeDtypeStruct((B, rows, C), jnp.bfloat16),
        grid_spec=pltpu.PrefetchScalarGridSpec(
            num_scalar_prefetch=0,
            grid=(B,),
            in_specs=[
                pl.BlockSpec((1, R, C), lambda b: (b, 0, 0)),
                pl.BlockSpec((k * k, 1, C), lambda b: (0, 0, 0)),
                pl.BlockSpec((1, C), lambda b: (0, 0)),
            ],
            out_specs=pl.BlockSpec((1, rows, C), lambda b: (b, 0, 0)),
        ),
        compiler_params=pltpu.CompilerParams(
            dimension_semantics=("parallel",)),
    )(xf, w_dw, b_dw)
    return out.reshape(B, H, Wp, C)[:, :, :W, :]


# ----------------------------------------------------------------------------
# Pallas kernel 4: per-channel affine (standalone eval BatchNorm, norm1)
# ----------------------------------------------------------------------------
def _affine_kernel(x_ref, s_ref, t_ref, o_ref):
    y = x_ref[...].astype(jnp.float32) * s_ref[...] + t_ref[...]
    o_ref[...] = y.astype(o_ref.dtype)


@jax.jit
def _affine_fused(x2, s, t):
    M, C = x2.shape
    TM = min(512, _ru(M, 8))
    Mp = _ru(M, TM)
    xp = jnp.pad(x2, ((0, Mp - M), (0, 0))) if Mp != M else x2
    out = pl.pallas_call(
        _affine_kernel,
        out_shape=jax.ShapeDtypeStruct((Mp, C), jnp.bfloat16),
        grid_spec=pltpu.PrefetchScalarGridSpec(
            num_scalar_prefetch=0,
            grid=(Mp // TM,),
            in_specs=[pl.BlockSpec((TM, C), lambda i: (i, 0)),
                      pl.BlockSpec((1, C), lambda i: (0, 0)),
                      pl.BlockSpec((1, C), lambda i: (0, 0))],
            out_specs=pl.BlockSpec((TM, C), lambda i: (i, 0)),
        ),
        compiler_params=pltpu.CompilerParams(
            dimension_semantics=("parallel",)),
    )(xp, s, t)
    return out[:M] if Mp != M else out


# ----------------------------------------------------------------------------
# plain-JAX glue for tiny convs (SE / CBAM / side1) -- MXU padding is waste
# ----------------------------------------------------------------------------
def _conv2d_jnp(x, w_hwio, b=None, dil=1):
    out = jax.lax.conv_general_dilated(
        x, w_hwio, window_strides=(1, 1), padding='SAME',
        rhs_dilation=(dil, dil),
        dimension_numbers=('NHWC', 'HWIO', 'NHWC'))
    if b is not None:
        out = out + b
    return out


def _conv1d_same_jnp(y, w, b):
    """y:(B,Cin,L); w:(Cout,Cin,ks); b:(Cout,) -> (B,Cout,L), 'same' padding."""
    out = jax.lax.conv_general_dilated(
        y, w, window_strides=(1,), padding='SAME',
        dimension_numbers=('NCH', 'OIH', 'NCH'))
    return out + b[None, :, None]


# ----------------------------------------------------------------------------
# pooling / upsample
# ----------------------------------------------------------------------------
def maxpool2x2(x):
    # nn.MaxPool2d(2, stride=2, ceil_mode=True)
    B, H, W, C = x.shape
    Ho, Wo = -(-H // 2), -(-W // 2)
    xp = jnp.pad(x, ((0, 0), (0, Ho * 2 - H), (0, Wo * 2 - W), (0, 0)),
                 constant_values=-jnp.inf)
    return jnp.max(xp.reshape(B, Ho, 2, Wo, 2, C), axis=(2, 4))


def maxpool3x3_s1(x):
    B, H, W, C = x.shape
    xp = jnp.pad(x, ((0, 0), (1, 1), (1, 1), (0, 0)), constant_values=-jnp.inf)
    out = None
    for ky in range(3):
        for kx in range(3):
            s = xp[:, ky:ky + H, kx:kx + W, :]
            out = s if out is None else jnp.maximum(out, s)
    return out


def upsample_bilinear(x, oh, ow):
    """F.interpolate(mode='bilinear', align_corners=False)."""
    B, H, W, C = x.shape
    if H == oh and W == ow:
        return x
    if oh == 2 * H and ow == 2 * W:
        # exact fixed-weight 2x bilinear -- no gathers (perf review item)
        xf = x.astype(jnp.float32)
        prev = jnp.concatenate([xf[:, :1], xf[:, :-1]], axis=1)
        nxt = jnp.concatenate([xf[:, 1:], xf[:, -1:]], axis=1)
        xf = jnp.stack([0.75 * xf + 0.25 * prev, 0.75 * xf + 0.25 * nxt],
                       axis=2).reshape(B, 2 * H, W, C)
        prev = jnp.concatenate([xf[:, :, :1], xf[:, :, :-1]], axis=2)
        nxt = jnp.concatenate([xf[:, :, 1:], xf[:, :, -1:]], axis=2)
        out = jnp.stack([0.75 * xf + 0.25 * prev, 0.75 * xf + 0.25 * nxt],
                        axis=3).reshape(B, 2 * H, 2 * W, C)
        return out.astype(x.dtype)

    # general (non-2x) fallback
    def coords(out_s, in_s):
        s = in_s / out_s
        src = (jnp.arange(out_s, dtype=jnp.float32) + 0.5) * s - 0.5
        src = jnp.clip(src, 0.0, in_s - 1.0)
        i0 = jnp.floor(src).astype(jnp.int32)
        i1 = jnp.minimum(i0 + 1, in_s - 1)
        return i0, i1, src - i0

    xf = x.astype(jnp.float32)
    y0, y1, wy = coords(oh, H)
    x0, x1, wx = coords(ow, W)
    a = xf[:, y0][:, :, x0]
    b = xf[:, y0][:, :, x1]
    c = xf[:, y1][:, :, x0]
    d = xf[:, y1][:, :, x1]
    wy = wy[None, :, None, None]
    wx = wx[None, None, :, None]
    top = a * (1.0 - wx) + b * wx
    bot = c * (1.0 - wx) + d * wx
    return (top * (1.0 - wy) + bot * wy).astype(x.dtype)


# ----------------------------------------------------------------------------
# deterministic parameter init (pre-transposed / bf16 weight layouts)
# ----------------------------------------------------------------------------
class KeyGen:
    def __init__(self, seed=0):
        self._key = jax.random.PRNGKey(seed)
        self._n = 0

    def next(self):
        self._n += 1
        return jax.random.fold_in(self._key, self._n)


def _prep_1x1(kg, in_ch, out_ch):
    w = jax.random.normal(kg.next(), (out_ch, in_ch),
                          jnp.float32) / jnp.sqrt(float(in_ch))
    b = jax.random.normal(kg.next(), (out_ch,), jnp.float32) * 0.01
    return {'k': 1, 'dil': 1, 'out_ch': out_ch,
            'w': w.T.astype(jnp.bfloat16),           # (C, O) bf16
            'b': b.reshape(1, out_ch),               # (1, O) f32
            'w_f': w.T}                              # f32 copy (tiny-K path)


def _prep_conv(kg, in_ch, out_ch, k, dil=1):
    if k == 1:
        p = _prep_1x1(kg, in_ch, out_ch)
        p['dil'] = dil
        return p
    fan_in = in_ch * k * k
    w = jax.random.normal(kg.next(), (out_ch, in_ch, k, k),
                          jnp.float32) / jnp.sqrt(float(fan_in))
    b = jax.random.normal(kg.next(), (out_ch,), jnp.float32) * 0.01
    w_flat = jnp.transpose(w, (2, 3, 1, 0)).reshape(k * k, in_ch, out_ch)
    return {'k': k, 'dil': dil, 'out_ch': out_ch,
            'w': w_flat.astype(jnp.bfloat16),        # (k*k, C, O) bf16
            'b': b.reshape(1, out_ch)}


def _prep_bn(out_ch):
    # eval-mode BatchNorm folded to per-channel scale/shift
    eps = 1e-5
    gamma = jnp.ones((out_ch,), jnp.float32)
    beta = jnp.zeros((out_ch,), jnp.float32)
    mean = jnp.zeros((out_ch,), jnp.float32)
    var = jnp.ones((out_ch,), jnp.float32)
    scale = gamma / jnp.sqrt(var + eps)
    shift = beta - mean * scale
    return {'s': scale.reshape(1, out_ch), 't': shift.reshape(1, out_ch)}


def _prep_dw(kg, ch, k, dil):
    wd = jax.random.normal(kg.next(), (ch, 1, k, k),
                           jnp.float32) / jnp.sqrt(float(k * k))
    bd = jax.random.normal(kg.next(), (ch,), jnp.float32) * 0.01
    w_dw = jnp.transpose(wd[:, 0], (1, 2, 0)).reshape(k * k, 1, ch)
    return {'w_dw': w_dw, 'b_dw': bd.reshape(1, ch), 'k': k, 'dil': dil}


# ----------------------------------------------------------------------------
# conv application (routes to the right kernel)
# ----------------------------------------------------------------------------
def apply_conv(p, x, mode="none", bn=None, res=None):
    B, H, W, C = x.shape
    O = p['out_ch']
    if bn is not None:
        s, t = bn['s'], bn['t']
    else:
        s, t = _const_rows(O)

    if p['k'] == 1:
        if C < 8:
            # tiny-K stem conv (1 -> 16): plain XLA, MXU padding is waste
            y = jnp.einsum('bhwc,co->bhwo', x.astype(jnp.float32), p['w_f'])
            y = _epilogue(y, p['b'], s, t, mode)
            if res is not None:
                y = y + res.astype(jnp.float32)
            return y.astype(jnp.bfloat16)
        return _matmul_fused(x, p['w'], p['b'], s, t, res, mode=mode)

    return _convk_fused(x, p['w'], p['b'], s, t, res,
                        k=p['k'], dil=p['dil'], mode=mode)


# ------------------------------- REBNCONV ------------------------------------
def init_rebnconv(kg, in_ch, out_ch, dirate=1, ks=5):
    return {'change': _prep_conv(kg, in_ch, out_ch, 1),
            'conv_s1': _prep_conv(kg, out_ch, out_ch, ks, dil=dirate),
            'conv_s2': _prep_conv(kg, out_ch, out_ch, ks, dil=dirate),
            'bn_s2': _prep_bn(out_ch)}


def apply_rebnconv(p, x):
    x = apply_conv(p['change'], x, mode="none")
    hx = apply_conv(p['conv_s1'], x, mode="none")
    # conv -> BN -> ReLU -> (+x) fused
    hx = apply_conv(p['conv_s2'], hx, mode="bn_relu", bn=p['bn_s2'], res=x)
    return hx


# ------------------------------- se_block ------------------------------------
def init_se(kg, c):
    ks = int(int(c / 20) * 2 + 1)
    if ks < 3:
        ks = 3
    w1 = jax.random.normal(kg.next(), (1, 2, ks), jnp.float32) / jnp.sqrt(2.0 * ks)
    b1 = jax.random.normal(kg.next(), (1,), jnp.float32) * 0.01
    w2 = jax.random.normal(kg.next(), (1, 1, ks), jnp.float32) / jnp.sqrt(1.0 * ks)
    b2 = jax.random.normal(kg.next(), (1,), jnp.float32) * 0.01
    return {'w1': w1, 'b1': b1, 'w2': w2, 'b2': b2}


def apply_se(p, x):
    xf = x.astype(jnp.float32)
    y_avg = jnp.mean(xf, axis=(1, 2))                # (B, C)
    y_max = jnp.max(xf, axis=(1, 2))                 # (B, C)
    y = jnp.stack([y_avg, y_max], axis=1)            # (B, 2, C)
    y = _conv1d_same_jnp(y, p['w1'], p['b1'])        # (B, 1, C)
    y = _conv1d_same_jnp(y, p['w2'], p['b2'])        # (B, 1, C)
    scale = jax.nn.sigmoid(y[:, 0, :])               # (B, C)
    return x * scale[:, None, None, :].astype(x.dtype)


# ------------------------------- CBAM ----------------------------------------
def init_cbam(kg, channel, spatial_kernel=7):
    eca = init_se(kg, channel)
    w_sp = jax.random.normal(kg.next(), (1, 4, spatial_kernel, spatial_kernel),
                             jnp.float32) / jnp.sqrt(4.0 * spatial_kernel ** 2)
    w_c1 = jax.random.normal(kg.next(), (2, channel),
                             jnp.float32) / jnp.sqrt(float(channel))
    b_c1 = jax.random.normal(kg.next(), (2,), jnp.float32) * 0.01
    return {'eca': eca,
            'w_sp': jnp.transpose(w_sp, (2, 3, 1, 0)),   # HWIO, no bias
            'w_c1': w_c1.T, 'b_c1': b_c1}


def apply_cbam(p, x):
    x = apply_se(p['eca'], x)
    xf = x.astype(jnp.float32)
    max_out = jnp.max(xf, axis=-1, keepdims=True)
    avg_out = jnp.mean(xf, axis=-1, keepdims=True)
    conv_out = jnp.einsum('bhwc,co->bhwo', xf, p['w_c1']) + p['b_c1']
    spatial = jnp.concatenate([max_out, avg_out, conv_out], axis=-1)
    spatial = _conv2d_jnp(spatial, p['w_sp'])
    return (jax.nn.sigmoid(spatial) * xf).astype(x.dtype)


# ------------------------------- Transfomer ----------------------------------
def init_transformer(kg, in_ch, out_ch=64, mlp_ratio=2):
    return {'change': _prep_conv(kg, in_ch, out_ch, 1),
            'norm1': _prep_bn(out_ch),
            'norm2': _prep_bn(out_ch),
            'attention': init_cbam(kg, out_ch, 11),
            'fc1': _prep_conv(kg, out_ch, out_ch * mlp_ratio, 1),
            'fc2': _prep_conv(kg, out_ch * mlp_ratio, out_ch, 1)}


def apply_transformer(p, x, extra_res=None):
    hx = apply_conv(p['change'], x, mode="none")
    hx1 = apply_cbam(p['attention'], hx)
    B, H, W, C = hx1.shape
    hx1 = _affine_fused(hx1.reshape(B * H * W, C), p['norm1']['s'],
                        p['norm1']['t']).reshape(B, H, W, C)
    hxs = hx1 + hx
    # MLP (Dropout == identity in eval); ReLU -> norm2 -> (+hx1) fused in fc2.
    y = apply_conv(p['fc1'], hxs, mode="relu")
    y = apply_conv(p['fc2'], y, mode="relu_bn", bn=p['norm2'], res=hx1)
    if extra_res is not None:
        y = y + extra_res
    return y


# ------------------------------- Inception -----------------------------------
def init_inception(kg, in_ch, out_ch):
    mid = out_ch // 4
    return {'change1': init_rebnconv(kg, mid, out_ch, ks=1),
            'change': init_rebnconv(kg, in_ch, mid, ks=1),
            'branch5x5_1': init_rebnconv(kg, mid, mid, ks=3, dirate=1),
            'branch5x5_2': init_rebnconv(kg, mid, mid, ks=3, dirate=1),
            'branch5x5_1d': init_rebnconv(kg, mid, mid, ks=3, dirate=2),
            'branch3x3_1': init_rebnconv(kg, mid, mid, ks=1),
            'branch3x3_2': init_rebnconv(kg, mid, mid, ks=3),
            'batch_pool': init_rebnconv(kg, mid, mid, ks=1),
            'conv_block1': init_rebnconv(kg, 4 * mid, out_ch, ks=3),
            'conv_block2': init_rebnconv(kg, out_ch, out_ch, ks=1),
            'trans': init_transformer(kg, out_ch, out_ch)}


def apply_inception(p, x):
    x = apply_rebnconv(p['change'], x)
    mx = apply_rebnconv(p['change1'], x)
    branch5 = apply_rebnconv(p['branch5x5_1d'], x)
    branch3 = apply_rebnconv(p['branch3x3_1'], x)
    branch3 = apply_rebnconv(p['branch3x3_2'], branch3)
    batch_pool = maxpool3x3_s1(x)
    batch_pool = apply_rebnconv(p['batch_pool'], batch_pool)
    branch7 = apply_rebnconv(p['branch5x5_1'], x)
    branch7 = apply_rebnconv(p['branch5x5_2'], branch7)
    output = jnp.concatenate([branch7, branch5, branch3, batch_pool], axis=-1)
    output = apply_rebnconv(p['conv_block1'], output)
    output = apply_rebnconv(p['conv_block2'], output)
    return apply_transformer(p['trans'], output, extra_res=mx)


# ------------------------------- ResDWConv / ResBlock ------------------------
def init_dwsep(kg, ch_in, ch_out, ks, dil=1):
    p = _prep_dw(kg, ch_in, ks, dil)
    p['pw'] = _prep_conv(kg, ch_in, ch_out, 1)
    return p


def apply_dwsep(p, x, mode="none", bn=None, res=None):
    dw = _dwconv_fused(x, p['w_dw'], p['b_dw'], k=p['k'], dil=p['dil'])
    return apply_conv(p['pw'], dw, mode=mode, bn=bn, res=res)


def init_resdw(kg, in_ch, out_ch, dirate=1, ks=3):
    return {'change': _prep_conv(kg, in_ch, out_ch, 1),
            'conv_s1': init_dwsep(kg, out_ch, out_ch, ks, dirate),
            'bn_s1': _prep_bn(out_ch),
            'conv_s2': init_dwsep(kg, out_ch, out_ch, ks, dirate),
            'bn_s2': _prep_bn(out_ch)}


def apply_resdw(p, x):
    x = apply_conv(p['change'], x, mode="none")
    hx = apply_dwsep(p['conv_s1'], x, mode="bn_relu", bn=p['bn_s1'])
    hx = apply_dwsep(p['conv_s2'], hx, mode="bn_relu", bn=p['bn_s2'], res=x)
    return hx


def init_resblock(kg, in_ch, out_ch, max_ks=7, layer_num=7):
    p = {'convin': init_rebnconv(kg, in_ch, out_ch, ks=1, dirate=1)}
    layers = []
    ks = max_ks
    for i in range(layer_num):
        ks = ks - i * 2
        if ks < 3:
            ks = 3
            layers.append(('reb', init_rebnconv(kg, out_ch, out_ch, ks=ks, dirate=1)))
        elif ks <= 5:
            layers.append(('reb', init_rebnconv(kg, out_ch, out_ch, ks=ks, dirate=1)))
        else:
            layers.append(('resdw', init_resdw(kg, out_ch, out_ch, ks=ks, dirate=1)))
    p['layers'] = layers
    p['trans'] = init_transformer(kg, out_ch, out_ch)
    return p


def apply_resblock(p, x):
    hxin = apply_rebnconv(p['convin'], x)
    hx = hxin
    for kind, lp in p['layers']:
        hx = apply_rebnconv(lp, hx) if kind == 'reb' else apply_resdw(lp, hx)
    return apply_transformer(p['trans'], hx, extra_res=hxin)


# ------------------------------- UNET ----------------------------------------
def init_unet(kg, in_ch=1, out_ch=1, num_blocks=None, max_ks=7):
    if num_blocks is None:
        num_blocks = [2, 2, 2, 2, 2]
    w_side = jax.random.normal(kg.next(), (out_ch, 16, 3, 3),
                               jnp.float32) / jnp.sqrt(16.0 * 9.0)
    b_side = jax.random.normal(kg.next(), (out_ch,), jnp.float32) * 0.01
    return {'stage1': init_resblock(kg, in_ch, 16, max_ks, num_blocks[0]),
            'stage2': init_resblock(kg, 16, 32, max_ks, num_blocks[1]),
            'stage3': init_resblock(kg, 32, 64, max_ks, num_blocks[2]),
            'stage4': init_resblock(kg, 64, 128, max_ks, num_blocks[3]),
            'stage5': init_inception(kg, 128, 256),
            'stage5d': init_inception(kg, 256, 128),
            'stage4d': init_resblock(kg, 256, 64, max_ks, num_blocks[3]),
            'stage3d': init_resblock(kg, 128, 32, max_ks, num_blocks[2]),
            'stage2d': init_resblock(kg, 64, 16, max_ks, num_blocks[1]),
            'stage1d': init_resblock(kg, 32, 16, max_ks, num_blocks[0]),
            'side1': {'w': jnp.transpose(w_side, (2, 3, 1, 0)), 'b': b_side}}


def unet_forward(p, x_nchw):
    # NCHW -> NHWC, bf16 activations end-to-end
    x = jnp.transpose(x_nchw, (0, 2, 3, 1)).astype(jnp.bfloat16)
    hx1 = apply_resblock(p['stage1'], x)
    hx2 = apply_resblock(p['stage2'], maxpool2x2(hx1))
    hx3 = apply_resblock(p['stage3'], maxpool2x2(hx2))
    hx4 = apply_resblock(p['stage4'], maxpool2x2(hx3))
    hxd = apply_inception(p['stage5'], maxpool2x2(hx4))
    hxd = apply_inception(p['stage5d'], hxd)
    hxd = upsample_bilinear(hxd, hx4.shape[1], hx4.shape[2])
    hxd = apply_resblock(p['stage4d'], jnp.concatenate([hxd, hx4], axis=-1))
    hxd = upsample_bilinear(hxd, hx3.shape[1], hx3.shape[2])
    hxd = apply_resblock(p['stage3d'], jnp.concatenate([hxd, hx3], axis=-1))
    hxd = upsample_bilinear(hxd, hx2.shape[1], hx2.shape[2])
    hxd = apply_resblock(p['stage2d'], jnp.concatenate([hxd, hx2], axis=-1))
    hxd = upsample_bilinear(hxd, hx1.shape[1], hx1.shape[2])
    hxd = apply_resblock(p['stage1d'], jnp.concatenate([hxd, hx1], axis=-1))
    hxd = _conv2d_jnp(hxd.astype(jnp.float32), p['side1']['w'], p['side1']['b'])
    out = jax.nn.sigmoid(hxd)
    return jnp.transpose(out, (0, 3, 1, 2))                # NHWC -> NCHW


# ----------------------------------------------------------------------------
if __name__ == "__main__":
    kg = KeyGen(seed=0)
    params = init_unet(kg, in_ch=1, out_ch=1)

    x = jax.random.normal(jax.random.PRNGKey(0), (2, 1, 16, 16), jnp.float32)

    out = unet_forward(params, x)
    out = jax.block_until_ready(out)

    assert out.shape == (2, 1, 16, 16), out.shape
    assert bool(jnp.all(jnp.isfinite(out)))
    assert bool(jnp.all((out >= 0.0) & (out <= 1.0)))
    print("KERNEL_OK")
</pallas_src>

<mosaic_0001>
module attributes {stable_mosaic.version = 11 : i64} {
  func.func @_mm_kernel(%arg0: i32, %arg1: memref<512x16xbf16, #tpu.memory_space<vmem>>, %arg2: memref<16x16xbf16, #tpu.memory_space<vmem>>, %arg3: memref<1x16xf32, #tpu.memory_space<vmem>>, %arg4: memref<1x16xf32, #tpu.memory_space<vmem>>, %arg5: memref<1x16xf32, #tpu.memory_space<vmem>>, %arg6: memref<512x16xbf16, #tpu.memory_space<vmem>>) attributes {dimension_semantics = [#tpu.dimension_semantics<parallel>], iteration_bounds = array<i64: 1>, scalar_prefetch = 0 : i64, scratch_operands = 0 : i64, tpu.core_type = #tpu.core_type<tc>, window_params = [{transform_indices = @transform_0, window_bounds = array<i64: 512, 16>}, {pipeline_mode = #tpu.pipeline_mode<synchronous>, transform_indices = @transform_1, window_bounds = array<i64: 16, 16>}, {pipeline_mode = #tpu.pipeline_mode<synchronous>, transform_indices = @transform_2, window_bounds = array<i64: 1, 16>}, {pipeline_mode = #tpu.pipeline_mode<synchronous>, transform_indices = @transform_3, window_bounds = array<i64: 1, 16>}, {pipeline_mode = #tpu.pipeline_mode<synchronous>, transform_indices = @transform_4, window_bounds = array<i64: 1, 16>}, {transform_indices = @transform_5, window_bounds = array<i64: 512, 16>}]} {
    %c0 = arith.constant 0 : index
    %c0_0 = arith.constant 0 : index
    %0 = vector.load %arg1[%c0, %c0_0] : memref<512x16xbf16, #tpu.memory_space<vmem>>, vector<512x16xbf16>
    %c0_1 = arith.constant 0 : index
    %c0_2 = arith.constant 0 : index
    %1 = vector.load %arg2[%c0_1, %c0_2] : memref<16x16xbf16, #tpu.memory_space<vmem>>, vector<16x16xbf16>
    %cst = arith.constant dense<0.000000e+00> : vector<512x16xf32>
    %2 = tpu.matmul %0, %1, %cst {dimension_numbers = #tpu.dot_dimension_numbers<[1], [0], [0], [1], [0, 0, 1, 1], [], []>} : vector<512x16xbf16>, vector<16x16xbf16>, vector<512x16xf32> -> vector<512x16xf32>
    %c0_3 = arith.constant 0 : index
    %c0_4 = arith.constant 0 : index
    %3 = vector.load %arg3[%c0_3, %c0_4] : memref<1x16xf32, #tpu.memory_space<vmem>>, vector<1x16xf32>
    %4 = vector.broadcast %3 : vector<1x16xf32> to vector<512x16xf32>
    %5 = arith.addf %2, %4 : vector<512x16xf32>
    %6 = arith.truncf %5 : vector<512x16xf32> to vector<512x16xbf16>
    %c0_5 = arith.constant 0 : index
    %c0_6 = arith.constant 0 : index
    %7 = vector.load %arg6[%c0_5, %c0_6] : memref<512x16xbf16, #tpu.memory_space<vmem>>, vector<512x16xbf16>
    tpu.vector_store %arg6[%c0_5, %c0_6], %6 {strides = array<i32>} : memref<512x16xbf16, #tpu.memory_space<vmem>>, vector<512x16xbf16>,
    return
  }
  func.func @transform_0(%arg0: i32) -> (i32, i32) {
    %c0_i32 = arith.constant 0 : i32
    %c0_i32_0 = arith.constant 0 : i32
    return %arg0, %c0_i32 : i32, i32
  }
  func.func @transform_1(%arg0: i32) -> (i32, i32) {
    %c0_i32 = arith.constant 0 : i32
    %c0_i32_0 = arith.constant 0 : i32
    %c0_i32_1 = arith.constant 0 : i32
    return %c0_i32, %c0_i32_0 : i32, i32
  }
  func.func @transform_2(%arg0: i32) -> (i32, i32) {
    %c0_i32 = arith.constant 0 : i32
    %c0_i32_0 = arith.constant 0 : i32
    %c0_i32_1 = arith.constant 0 : i32
    return %c0_i32, %c0_i32_0 : i32, i32
  }
  func.func @transform_3(%arg0: i32) -> (i32, i32) {
    %c0_i32 = arith.constant 0 : i32
    %c0_i32_0 = arith.constant 0 : i32
    %c0_i32_1 = arith.constant 0 : i32
    return %c0_i32, %c0_i32_0 : i32, i32
  }
  func.func @transform_4(%arg0: i32) -> (i32, i32) {
    %c0_i32 = arith.constant 0 : i32
    %c0_i32_0 = arith.constant 0 : i32
    %c0_i32_1 = arith.constant 0 : i32
    return %c0_i32, %c0_i32_0 : i32, i32
  }
  func.func @transform_5(%arg0: i32) -> (i32, i32) {
    %c0_i32 = arith.constant 0 : i32
    %c0_i32_0 = arith.constant 0 : i32
    return %arg0, %c0_i32 : i32, i32
  }
}

</mosaic_0001>

<bundles_post_ra>
// kernel: _matmul_fused.1
= control target key start
LH: loop header
LB: loop body
LE: loop exit
PB: predicated region body
PF: predicated region fallthrough
CT: control target
= control target key end

     0   :  { %10 = vsyncpa [#allocation3], 0  ;;  %s1631_s0 = inlined_call_operand.hbm [shape: bf16[512,16], index: 0, kind: input, shape index: {}]   ;;  %s1632_s1 = inlined_call_operand.hbm [shape: bf16[16,16], index: 1, kind: input, shape index: {}]   ;;  %s1633_s2 = inlined_call_operand.vmem [shape: f32[1,16], index: 2, kind: input, shape index: {}]   ;;  %s1634_s3 = inlined_call_operand.vmem [shape: f32[1,16], index: 3, kind: input, shape index: {}]   ;;  %s1635_s4 = inlined_call_operand.vmem [shape: f32[1,16], index: 4, kind: input, shape index: {}]   ;;  %s1636_s5 = inlined_call_operand.hbm [shape: bf16[512,16], index: 5, kind: output, shape index: {}]  }
   0x1   :  { %11 = vsyncpa [#allocation6], 0 }
   0x2   :  { %12 = vsyncpa [#allocation4], 0  ;;  %s1413_s18 = smov [#allocation2]  }
   0x3   :  { %s18_s19 = sshll.u32 %s1413_s18, 4  ;;  %s19_s19 = int_to_ptr.vmem [resolvable:$true] %s18_s19 }
   0x4   :  { %s1355_s20 = scalar_lea.vmem %s19_s19, 4096  ;;  %p1360_p1 = scmp.lt.s32.totalorder %s19_s19, %s19_s19 }
   0x5   :  { %p1356_p0 = scmp.ne.s32.totalorder %s19_s19, %s1355_s20  ;;  %p1361_p2 = scmp.lt.s32.totalorder %s1355_s20, %s1355_s20 }
   0x7   :  { %p1362_p3 = por %p1361_p2, %p1360_p1 }
   0x9   :  { %p1363_p4 = pnand %p1362_p3, %p1356_p0 }
   0xb   :  { %1366 = shalt.err (!%p1363_p4)
}
   0xc   :  { %s1414_s3 = smov 64   ;;  %s1415_s21 = smov 4  }
   0xd   :  { %24 = dma.hbm_to_vmem [thread:$0]  %s1631_s0, 4096, %s19_s19, [#allocation3], %s1414_s3, %s1414_s3, %s1415_s21  }
   0xe   :  { %s1416_s23 = smov [#allocation5]  }
   0xf   :  { %s30_s24 = sshll.u32 %s1416_s23, 4  ;;  %s31_s24 = int_to_ptr.vmem [resolvable:$true] %s30_s24 }
  0x10   :  { %s1375_s25 = scalar_lea.vmem %s31_s24, 128  ;;  %p1380_p6 = scmp.lt.s32.totalorder %s31_s24, %s31_s24 }
  0x11   :  { %p1376_p5 = scmp.ne.s32.totalorder %s31_s24, %s1375_s25  ;;  %p1381_p7 = scmp.lt.s32.totalorder %s1375_s25, %s1375_s25 }
  0x13   :  { %p1382_p8 = por %p1381_p7, %p1380_p6 }
  0x15   :  { %p1383_p9 = pnand %p1382_p8, %p1376_p5 }
  0x17   :  { %1386 = shalt.err (!%p1383_p9)
}
  0x18   :  { %36 = dma.hbm_to_vmem [thread:$0]  %s1632_s1, 128, %s31_s24, [#allocation6], %s1414_s3, %s1414_s3, %s1415_s21  }
  0x19   :  { %1407 = dma.done.wait [#allocation3], 4096  }
  0x1a   :  { %1408 = vsyncadd [#allocation3], 4294963200 }
  0x1b   :  { %1409 = dma.done.wait [#allocation6], 128  }
  0x1c   :  { %1410 = vsyncadd [#allocation6], 4294967168  ;;  %v1314_v0 = vld [vmem:[#allocation5] sm:$0xff]   ;;  %vm289_vm0 = vcmask 130048   ;;  %v1317_v3 = vld [vmem:[#allocation2 + $0x8] sm:$0xff]   ;;  %vm931_vm1 = vcmask 125952  }
  0x1d   :  { %v1315_v1 = vld [vmem:[#allocation2] sm:$0xff]   ;;  %1241 = vmatprep.subr.bf16.mxu0 %v1314_v0  ;;  %1307 = vmatprep.subr.bf16.mxu1 %v1314_v0  ;;  %v1318_v4 = vld [vmem:[#allocation2 + $0x88] sm:$0xff]   ;;  %v1319_v5 = vld [vmem:[#allocation2 + $0x10] sm:$0xff]  }
  0x1e   :  { %v1316_v2 = vld [vmem:[#allocation2 + $0x80] sm:$0xff]   ;;  %1242 = vmatpush3.bf16.msra.mxu0 %v1314_v0  ;;  %1308 = vmatpush3.bf16.msra.mxu1 %v1314_v0  ;;  %v1320_v6 = vld [vmem:[#allocation2 + $0x90] sm:$0xff]   ;;  %v1321_v7 = vld [vmem:[#allocation2 + $0x18] sm:$0xff]  }
  0x1f   :  { %1243 = vmatprep.mubr.msk.bf16.mxu0 %vm289_vm0, %v1315_v1  ;;  %1275 = vmatprep.mubr.msk.bf16.mxu1 %vm289_vm0, %v1316_v2  ;;  %v1322_v8 = vld [vmem:[#allocation2 + $0x98] sm:$0xff]   ;;  %v1323_v9 = vld [vmem:[#allocation2 + $0x20] sm:$0xff]   ;;  %v1325_v11 = vld [vmem:[#allocation2 + $0x28] sm:$0xff]  }
  0x20   :  { %v1324_v10 = vld [vmem:[#allocation2 + $0xa0] sm:$0xff]   ;;  %v1326_v12 = vld [vmem:[#allocation2 + $0xa8] sm:$0xff]   ;;  %v1327_v13 = vld [vmem:[#allocation2 + $0x30] sm:$0xff]  }
  0x21   :  { %1244 = vmatmul.mubr.msk.bf16.vlgmr.msra.gmra.mxu0 %vm289_vm0, %v1317_v3  ;;  %1276 = vmatmul.mubr.msk.bf16.vlgmr.msra.gmra.mxu1 %vm289_vm0, %v1318_v4  ;;  %v1328_v14 = vld [vmem:[#allocation2 + $0xb0] sm:$0xff]   ;;  %v1329_v15 = vld [vmem:[#allocation2 + $0x38] sm:$0xff]   ;;  %v1331_v17 = vld [vmem:[#allocation2 + $0x40] sm:$0xff]  }
  0x22   :  { %1247 = vmatprep.mubr.msk.bf16.mxu0 %vm289_vm0, %v1319_v5  ;;  %1279 = vmatprep.mubr.msk.bf16.mxu1 %vm289_vm0, %v1320_v6  ;;  %v1330_v16 = vld [vmem:[#allocation2 + $0xb8] sm:$0xff]   ;;  %v1332_v18 = vld [vmem:[#allocation2 + $0xc0] sm:$0xff]   ;;  %v1333_v19 = vld [vmem:[#allocation2 + $0x48] sm:$0xff]  }
  0x23   :  { %v1334_v20 = vld [vmem:[#allocation2 + $0xc8] sm:$0xff]   ;;  %v1335_v21 = vld [vmem:[#allocation2 + $0x50] sm:$0xff]   ;;  %v1337_v23 = vld [vmem:[#allocation2 + $0x58] sm:$0xff]  }
  0x24   :  { %v1336_v22 = vld [vmem:[#allocation2 + $0xd0] sm:$0xff]   ;;  %v1338_v24 = vld [vmem:[#allocation2 + $0xd8] sm:$0xff]   ;;  %v1339_v25 = vld [vmem:[#allocation2 + $0x60] sm:$0xff]  }
  0x25   :  { %v1340_v26 = vld [vmem:[#allocation2 + $0xe0] sm:$0xff]   ;;  %v1341_v27 = vld [vmem:[#allocation2 + $0x68] sm:$0xff]   ;;  %v1343_v29 = vld [vmem:[#allocation2 + $0x70] sm:$0xff]  }
  0x26   :  { %v1342_v28 = vld [vmem:[#allocation2 + $0xe8] sm:$0xff]   ;;  %v1344_v30 = vld [vmem:[#allocation2 + $0xf0] sm:$0xff]   ;;  %v1345_v31 = vld [vmem:[#allocation2 + $0x78] sm:$0xff]  }
  0x27   :  { %v1346_v32 = vld [vmem:[#allocation2 + $0xf8] sm:$0xff]   ;;  %v1495_v33 = vld [vmem:[%s1633_s2] ss:$0 sm:$0xff]  ;;  %s1417_s2 = smov [#allocation7]  }
  0x28   :  { %s1001_s28 = sshll.u32 %s1417_s2, 4  ;;  %s1002_s28 = int_to_ptr.vmem [resolvable:$true] %s1001_s28 }
  0x29   :  { %1248 = vmatmul.mubr.msk.bf16.gmra.mxu0 %vm289_vm0, %v1321_v7  ;;  %1280 = vmatmul.mubr.msk.bf16.gmra.mxu1 %vm289_vm0, %v1322_v8  ;;  %s1387_s29 = scalar_lea.vmem %s1002_s28, 4096  ;;  %p1392_p11 = scmp.lt.s32.totalorder %s1002_s28, %s1002_s28 }
  0x2a   :  { %1251 = vmatprep.mubr.msk.bf16.mxu0 %vm289_vm0, %v1323_v9  ;;  %1283 = vmatprep.mubr.msk.bf16.mxu1 %vm289_vm0, %v1324_v10  ;;  %p1388_p10 = scmp.ne.s32.totalorder %s1002_s28, %s1387_s29  ;;  %p1393_p12 = scmp.lt.s32.totalorder %s1387_s29, %s1387_s29 }
  0x2c   :  { %p1394_p13 = por %p1393_p12, %p1392_p11 }
  0x2e   :  { %p1395_p0 = pnand %p1394_p13, %p1388_p10 }
  0x31   :  { %1252 = vmatmul.mubr.msk.bf16.gmra.mxu0 %vm289_vm0, %v1325_v11  ;;  %1284 = vmatmul.mubr.msk.bf16.gmra.mxu1 %vm289_vm0, %v1326_v12 }
  0x32   :  { %1255 = vmatprep.mubr.msk.bf16.mxu0 %vm289_vm0, %v1327_v13  ;;  %1287 = vmatprep.mubr.msk.bf16.mxu1 %vm289_vm0, %v1328_v14 }
  0x39   :  { %1256 = vmatmul.mubr.msk.bf16.gmra.mxu0 %vm289_vm0, %v1329_v15  ;;  %1288 = vmatmul.mubr.msk.bf16.gmra.mxu1 %vm289_vm0, %v1330_v16 }
  0x3a   :  { %1259 = vmatprep.mubr.msk.bf16.mxu0 %vm289_vm0, %v1331_v17  ;;  %1291 = vmatprep.mubr.msk.bf16.mxu1 %vm289_vm0, %v1332_v18 }
  0x41   :  { %1260 = vmatmul.mubr.msk.bf16.gmra.mxu0 %vm289_vm0, %v1333_v19  ;;  %1292 = vmatmul.mubr.msk.bf16.gmra.mxu1 %vm289_vm0, %v1334_v20 }
  0x42   :  { %1263 = vmatprep.mubr.msk.bf16.mxu0 %vm289_vm0, %v1335_v21  ;;  %1295 = vmatprep.mubr.msk.bf16.mxu1 %vm289_vm0, %v1336_v22 }
  0x49   :  { %1264 = vmatmul.mubr.msk.bf16.gmra.mxu0 %vm289_vm0, %v1337_v23  ;;  %1296 = vmatmul.mubr.msk.bf16.gmra.mxu1 %vm289_vm0, %v1338_v24 }
  0x4a   :  { %1267 = vmatprep.mubr.msk.bf16.mxu0 %vm289_vm0, %v1339_v25  ;;  %1299 = vmatprep.mubr.msk.bf16.mxu1 %vm289_vm0, %v1340_v26 }
  0x51   :  { %1268 = vmatmul.mubr.msk.bf16.gmra.mxu0 %vm289_vm0, %v1341_v27  ;;  %1300 = vmatmul.mubr.msk.bf16.gmra.mxu1 %vm289_vm0, %v1342_v28 }
  0x52   :  { %1271 = vmatprep.mubr.msk.bf16.mxu0 %vm289_vm0, %v1343_v29  ;;  %1303 = vmatprep.mubr.msk.bf16.mxu1 %vm289_vm0, %v1344_v30 }
  0x59   :  { %1272 = vmatmul.mubr.msk.bf16.gmra.mxu0 %vm289_vm0, %v1345_v31  ;;  %1304 = vmatmul.mubr.msk.bf16.gmra.mxu1 %vm289_vm0, %v1346_v32 }
  0xe1   :  { %v1245_v34 = vpop.f32.mrf.mxu0  ;;  %v1277_v35 = vpop.f32.mrf.mxu1 }
  0xe2   :  { %v429_v36 = vadd.f32 %v1245_v34, %v1495_v33  ;;  %v557_v37 = vadd.f32 %v1277_v35, %v1495_v33 }
  0xe3   :  { %v420_v38 = vpop.f32.mrf.mxu0  ;;  %v548_v39 = vpop.f32.mrf.mxu1 }
  0xe4   :  { %v1146_v40 = vpack.c.bf16 %v429_v36, %v429_v36  ;;  %v1178_v41 = vpack.c.bf16 %v557_v37, %v557_v37  ;;  %v421_v42 = vadd.f32 %v1495_v33, %v420_v38  ;;  %v549_v43 = vadd.f32 %v1495_v33, %v548_v39 }
  0xe5   :  { %v1246_v44 = vpop.f32.mrf.mxu0  ;;  %v1278_v45 = vpop.f32.mrf.mxu1 }
  0xe6   :  { %934 = vst.msk [vmem:[#allocation7 + $0x8] sm:$0xf] %vm931_vm1, %v1146_v40  ;;  %966 = vst.msk [vmem:[#allocation7 + $0x88] sm:$0xf] %vm931_vm1, %v1178_v41  ;;  %v1144_v46 = vpack.c.bf16 %v421_v42, %v421_v42  ;;  %v1176_v47 = vpack.c.bf16 %v549_v43, %v549_v43  ;;  %v432_v48 = vadd.f32 %v1246_v44, %v1495_v33 }
  0xe7   :  { %v560_v49 = vadd.f32 %v1278_v45, %v1495_v33  ;;  %v423_v50 = vpop.f32.mrf.mxu0  ;;  %v551_v51 = vpop.f32.mrf.mxu1 }
  0xe8   :  { %932 = vst.msk [vmem:[#allocation7] sm:$0xf] %vm931_vm1, %v1144_v46  ;;  %964 = vst.msk [vmem:[#allocation7 + $0x80] sm:$0xf] %vm931_vm1, %v1176_v47  ;;  %v1147_v52 = vpack.c.bf16 %v432_v48, %v432_v48  ;;  %v424_v54 = vadd.f32 %v1495_v33, %v423_v50  ;;  %v552_v55 = vadd.f32 %v1495_v33, %v551_v51 }
  0xe9   :  { %v1179_v53 = vpack.c.bf16 %v560_v49, %v560_v49  ;;  %v1249_v56 = vpop.f32.mrf.mxu0  ;;  %v1281_v57 = vpop.f32.mrf.mxu1 }
  0xea   :  { %935 = vst.msk [vmem:[#allocation7 + $0xc] sm:$0xf] %vm931_vm1, %v1147_v52  ;;  %v1145_v58 = vpack.c.bf16 %v424_v54, %v424_v54  ;;  %v1177_v59 = vpack.c.bf16 %v552_v55, %v552_v55  ;;  %v445_v60 = vadd.f32 %v1249_v56, %v1495_v33  ;;  %v573_v61 = vadd.f32 %v1281_v57, %v1495_v33 }
  0xeb   :  { %967 = vst.msk [vmem:[#allocation7 + $0x8c] sm:$0xf] %vm931_vm1, %v1179_v53  ;;  %v436_v62 = vpop.f32.mrf.mxu0  ;;  %v564_v63 = vpop.f32.mrf.mxu1 }
  0xec   :  { %933 = vst.msk [vmem:[#allocation7 + $0x4] sm:$0xf] %vm931_vm1, %v1145_v58  ;;  %965 = vst.msk [vmem:[#allocation7 + $0x84] sm:$0xf] %vm931_vm1, %v1177_v59  ;;  %v1150_v0 = vpack.c.bf16 %v445_v60, %v445_v60  ;;  %v1182_v1 = vpack.c.bf16 %v573_v61, %v573_v61  ;;  %v437_v2 = vadd.f32 %v1495_v33, %v436_v62 }
  0xed   :  { %v565_v3 = vadd.f32 %v1495_v33, %v564_v63  ;;  %v1250_v4 = vpop.f32.mrf.mxu0  ;;  %v1282_v5 = vpop.f32.mrf.mxu1 }
  0xee   :  { %938 = vst.msk [vmem:[#allocation7 + $0x18] sm:$0xf] %vm931_vm1, %v1150_v0  ;;  %970 = vst.msk [vmem:[#allocation7 + $0x98] sm:$0xf] %vm931_vm1, %v1182_v1  ;;  %v1148_v6 = vpack.c.bf16 %v437_v2, %v437_v2  ;;  %v448_v8 = vadd.f32 %v1250_v4, %v1495_v33  ;;  %v576_v9 = vadd.f32 %v1282_v5, %v1495_v33 }
  0xef   :  { %v1180_v7 = vpack.c.bf16 %v565_v3, %v565_v3  ;;  %v439_v10 = vpop.f32.mrf.mxu0  ;;  %v567_v11 = vpop.f32.mrf.mxu1 }
  0xf0   :  { %936 = vst.msk [vmem:[#allocation7 + $0x10] sm:$0xf] %vm931_vm1, %v1148_v6  ;;  %v1151_v12 = vpack.c.bf16 %v448_v8, %v448_v8  ;;  %v1183_v13 = vpack.c.bf16 %v576_v9, %v576_v9  ;;  %v440_v14 = vadd.f32 %v1495_v33, %v439_v10  ;;  %v568_v15 = vadd.f32 %v1495_v33, %v567_v11 }
  0xf1   :  { %968 = vst.msk [vmem:[#allocation7 + $0x90] sm:$0xf] %vm931_vm1, %v1180_v7  ;;  %v1253_v16 = vpop.f32.mrf.mxu0  ;;  %v1285_v17 = vpop.f32.mrf.mxu1 }
  0xf2   :  { %939 = vst.msk [vmem:[#allocation7 + $0x1c] sm:$0xf] %vm931_vm1, %v1151_v12  ;;  %971 = vst.msk [vmem:[#allocation7 + $0x9c] sm:$0xf] %vm931_vm1, %v1183_v13  ;;  %v1149_v18 = vpack.c.bf16 %v440_v14, %v440_v14  ;;  %v1181_v19 = vpack.c.bf16 %v568_v15, %v568_v15  ;;  %v461_v20 = vadd.f32 %v1253_v16, %v1495_v33 }
  0xf3   :  { %v589_v21 = vadd.f32 %v1285_v17, %v1495_v33  ;;  %v452_v22 = vpop.f32.mrf.mxu0  ;;  %v580_v23 = vpop.f32.mrf.mxu1 }
  0xf4   :  { %937 = vst.msk [vmem:[#allocation7 + $0x14] sm:$0xf] %vm931_vm1, %v1149_v18  ;;  %969 = vst.msk [vmem:[#allocation7 + $0x94] sm:$0xf] %vm931_vm1, %v1181_v19  ;;  %v1154_v24 = vpack.c.bf16 %v461_v20, %v461_v20  ;;  %v453_v26 = vadd.f32 %v1495_v33, %v452_v22  ;;  %v581_v27 = vadd.f32 %v1495_v33, %v580_v23 }
  0xf5   :  { %v1186_v25 = vpack.c.bf16 %v589_v21, %v589_v21  ;;  %v1254_v28 = vpop.f32.mrf.mxu0  ;;  %v1286_v29 = vpop.f32.mrf.mxu1 }
  0xf6   :  { %942 = vst.msk [vmem:[#allocation7 + $0x28] sm:$0xf] %vm931_vm1, %v1154_v24  ;;  %v1152_v30 = vpack.c.bf16 %v453_v26, %v453_v26  ;;  %v1184_v31 = vpack.c.bf16 %v581_v27, %v581_v27  ;;  %v464_v32 = vadd.f32 %v1254_v28, %v1495_v33  ;;  %v592_v34 = vadd.f32 %v1286_v29, %v1495_v33 }
  0xf7   :  { %974 = vst.msk [vmem:[#allocation7 + $0xa8] sm:$0xf] %vm931_vm1, %v1186_v25  ;;  %v455_v35 = vpop.f32.mrf.mxu0  ;;  %v583_v36 = vpop.f32.mrf.mxu1 }
  0xf8   :  { %940 = vst.msk [vmem:[#allocation7 + $0x20] sm:$0xf] %vm931_vm1, %v1152_v30  ;;  %972 = vst.msk [vmem:[#allocation7 + $0xa0] sm:$0xf] %vm931_vm1, %v1184_v31  ;;  %v1155_v37 = vpack.c.bf16 %v464_v32, %v464_v32  ;;  %v1187_v38 = vpack.c.bf16 %v592_v34, %v592_v34  ;;  %v456_v39 = vadd.f32 %v1495_v33, %v455_v35 }
  0xf9   :  { %v584_v40 = vadd.f32 %v1495_v33, %v583_v36  ;;  %v1257_v41 = vpop.f32.mrf.mxu0  ;;  %v1289_v42 = vpop.f32.mrf.mxu1 }
  0xfa   :  { %943 = vst.msk [vmem:[#allocation7 + $0x2c] sm:$0xf] %vm931_vm1, %v1155_v37  ;;  %975 = vst.msk [vmem:[#allocation7 + $0xac] sm:$0xf] %vm931_vm1, %v1187_v38  ;;  %v1153_v43 = vpack.c.bf16 %v456_v39, %v456_v39  ;;  %v477_v45 = vadd.f32 %v1257_v41, %v1495_v33  ;;  %v605_v46 = vadd.f32 %v1289_v42, %v1495_v33 }
  0xfb   :  { %v1185_v44 = vpack.c.bf16 %v584_v40, %v584_v40  ;;  %v468_v47 = vpop.f32.mrf.mxu0  ;;  %v596_v48 = vpop.f32.mrf.mxu1 }
  0xfc   :  { %941 = vst.msk [vmem:[#allocation7 + $0x24] sm:$0xf] %vm931_vm1, %v1153_v43  ;;  %v1158_v49 = vpack.c.bf16 %v477_v45, %v477_v45  ;;  %v1190_v50 = vpack.c.bf16 %v605_v46, %v605_v46  ;;  %v469_v51 = vadd.f32 %v1495_v33, %v468_v47  ;;  %v597_v52 = vadd.f32 %v1495_v33, %v596_v48 }
  0xfd   :  { %973 = vst.msk [vmem:[#allocation7 + $0xa4] sm:$0xf] %vm931_vm1, %v1185_v44  ;;  %v1258_v53 = vpop.f32.mrf.mxu0  ;;  %v1290_v54 = vpop.f32.mrf.mxu1 }
  0xfe   :  { %946 = vst.msk [vmem:[#allocation7 + $0x38] sm:$0xf] %vm931_vm1, %v1158_v49  ;;  %978 = vst.msk [vmem:[#allocation7 + $0xb8] sm:$0xf] %vm931_vm1, %v1190_v50  ;;  %v1156_v55 = vpack.c.bf16 %v469_v51, %v469_v51  ;;  %v1188_v56 = vpack.c.bf16 %v597_v52, %v597_v52  ;;  %v480_v57 = vadd.f32 %v1258_v53, %v1495_v33 }
  0xff   :  { %v608_v58 = vadd.f32 %v1290_v54, %v1495_v33  ;;  %v471_v59 = vpop.f32.mrf.mxu0  ;;  %v599_v60 = vpop.f32.mrf.mxu1 }
 0x100   :  { %944 = vst.msk [vmem:[#allocation7 + $0x30] sm:$0xf] %vm931_vm1, %v1156_v55  ;;  %976 = vst.msk [vmem:[#allocation7 + $0xb0] sm:$0xf] %vm931_vm1, %v1188_v56  ;;  %v1159_v61 = vpack.c.bf16 %v480_v57, %v480_v57  ;;  %v472_v63 = vadd.f32 %v1495_v33, %v471_v59  ;;  %v600_v0 = vadd.f32 %v1495_v33, %v599_v60 }
 0x101   :  { %v1191_v62 = vpack.c.bf16 %v608_v58, %v608_v58  ;;  %v1261_v1 = vpop.f32.mrf.mxu0  ;;  %v1293_v2 = vpop.f32.mrf.mxu1 }
 0x102   :  { %947 = vst.msk [vmem:[#allocation7 + $0x3c] sm:$0xf] %vm931_vm1, %v1159_v61  ;;  %v1157_v3 = vpack.c.bf16 %v472_v63, %v472_v63  ;;  %v1189_v4 = vpack.c.bf16 %v600_v0, %v600_v0  ;;  %v493_v5 = vadd.f32 %v1261_v1, %v1495_v33  ;;  %v621_v6 = vadd.f32 %v1293_v2, %v1495_v33 }
 0x103   :  { %979 = vst.msk [vmem:[#allocation7 + $0xbc] sm:$0xf] %vm931_vm1, %v1191_v62  ;;  %v484_v7 = vpop.f32.mrf.mxu0  ;;  %v612_v8 = vpop.f32.mrf.mxu1 }
 0x104   :  { %945 = vst.msk [vmem:[#allocation7 + $0x34] sm:$0xf] %vm931_vm1, %v1157_v3  ;;  %977 = vst.msk [vmem:[#allocation7 + $0xb4] sm:$0xf] %vm931_vm1, %v1189_v4  ;;  %v1162_v9 = vpack.c.bf16 %v493_v5, %v493_v5  ;;  %v1194_v10 = vpack.c.bf16 %v621_v6, %v621_v6  ;;  %v485_v11 = vadd.f32 %v1495_v33, %v484_v7 }
 0x105   :  { %v613_v12 = vadd.f32 %v1495_v33, %v612_v8  ;;  %v1262_v13 = vpop.f32.mrf.mxu0  ;;  %v1294_v14 = vpop.f32.mrf.mxu1 }
 0x106   :  { %950 = vst.msk [vmem:[#allocation7 + $0x48] sm:$0xf] %vm931_vm1, %v1162_v9  ;;  %982 = vst.msk [vmem:[#allocation7 + $0xc8] sm:$0xf] %vm931_vm1, %v1194_v10  ;;  %v1160_v15 = vpack.c.bf16 %v485_v11, %v485_v11  ;;  %v496_v17 = vadd.f32 %v1262_v13, %v1495_v33  ;;  %v624_v18 = vadd.f32 %v1294_v14, %v1495_v33 }
 0x107   :  { %v1192_v16 = vpack.c.bf16 %v613_v12, %v613_v12  ;;  %v487_v19 = vpop.f32.mrf.mxu0  ;;  %v615_v20 = vpop.f32.mrf.mxu1 }
 0x108   :  { %948 = vst.msk [vmem:[#allocation7 + $0x40] sm:$0xf] %vm931_vm1, %v1160_v15  ;;  %v1163_v21 = vpack.c.bf16 %v496_v17, %v496_v17  ;;  %v1195_v22 = vpack.c.bf16 %v624_v18, %v624_v18  ;;  %v488_v23 = vadd.f32 %v1495_v33, %v487_v19  ;;  %v616_v24 = vadd.f32 %v1495_v33, %v615_v20 }
 0x109   :  { %980 = vst.msk [vmem:[#allocation7 + $0xc0] sm:$0xf] %vm931_vm1, %v1192_v16  ;;  %v1265_v25 = vpop.f32.mrf.mxu0  ;;  %v1297_v26 = vpop.f32.mrf.mxu1 }
 0x10a   :  { %951 = vst.msk [vmem:[#allocation7 + $0x4c] sm:$0xf] %vm931_vm1, %v1163_v21  ;;  %983 = vst.msk [vmem:[#allocation7 + $0xcc] sm:$0xf] %vm931_vm1, %v1195_v22  ;;  %v1161_v27 = vpack.c.bf16 %v488_v23, %v488_v23  ;;  %v1193_v28 = vpack.c.bf16 %v616_v24, %v616_v24  ;;  %v509_v29 = vadd.f32 %v1265_v25, %v1495_v33 }
 0x10b   :  { %v637_v30 = vadd.f32 %v1297_v26, %v1495_v33  ;;  %v500_v31 = vpop.f32.mrf.mxu0  ;;  %v628_v32 = vpop.f32.mrf.mxu1 }
 0x10c   :  { %949 = vst.msk [vmem:[#allocation7 + $0x44] sm:$0xf] %vm931_vm1, %v1161_v27  ;;  %981 = vst.msk [vmem:[#allocation7 + $0xc4] sm:$0xf] %vm931_vm1, %v1193_v28  ;;  %v1166_v34 = vpack.c.bf16 %v509_v29, %v509_v29  ;;  %v501_v36 = vadd.f32 %v1495_v33, %v500_v31  ;;  %v629_v37 = vadd.f32 %v1495_v33, %v628_v32 }
 0x10d   :  { %v1198_v35 = vpack.c.bf16 %v637_v30, %v637_v30  ;;  %v1266_v38 = vpop.f32.mrf.mxu0  ;;  %v1298_v39 = vpop.f32.mrf.mxu1 }
 0x10e   :  { %954 = vst.msk [vmem:[#allocation7 + $0x58] sm:$0xf] %vm931_vm1, %v1166_v34  ;;  %v1164_v40 = vpack.c.bf16 %v501_v36, %v501_v36  ;;  %v1196_v41 = vpack.c.bf16 %v629_v37, %v629_v37  ;;  %v512_v42 = vadd.f32 %v1266_v38, %v1495_v33  ;;  %v640_v43 = vadd.f32 %v1298_v39, %v1495_v33 }
 0x10f   :  { %986 = vst.msk [vmem:[#allocation7 + $0xd8] sm:$0xf] %vm931_vm1, %v1198_v35  ;;  %v503_v44 = vpop.f32.mrf.mxu0  ;;  %v631_v45 = vpop.f32.mrf.mxu1 }
 0x110   :  { %952 = vst.msk [vmem:[#allocation7 + $0x50] sm:$0xf] %vm931_vm1, %v1164_v40  ;;  %984 = vst.msk [vmem:[#allocation7 + $0xd0] sm:$0xf] %vm931_vm1, %v1196_v41  ;;  %v1167_v46 = vpack.c.bf16 %v512_v42, %v512_v42  ;;  %v1199_v47 = vpack.c.bf16 %v640_v43, %v640_v43  ;;  %v504_v48 = vadd.f32 %v1495_v33, %v503_v44 }
 0x111   :  { %v632_v49 = vadd.f32 %v1495_v33, %v631_v45  ;;  %v1269_v50 = vpop.f32.mrf.mxu0  ;;  %v1301_v51 = vpop.f32.mrf.mxu1 }
 0x112   :  { %955 = vst.msk [vmem:[#allocation7 + $0x5c] sm:$0xf] %vm931_vm1, %v1167_v46  ;;  %987 = vst.msk [vmem:[#allocation7 + $0xdc] sm:$0xf] %vm931_vm1, %v1199_v47  ;;  %v1165_v52 = vpack.c.bf16 %v504_v48, %v504_v48  ;;  %v525_v54 = vadd.f32 %v1269_v50, %v1495_v33  ;;  %v653_v55 = vadd.f32 %v1301_v51, %v1495_v33 }
 0x113   :  { %v1197_v53 = vpack.c.bf16 %v632_v49, %v632_v49  ;;  %v516_v56 = vpop.f32.mrf.mxu0  ;;  %v644_v57 = vpop.f32.mrf.mxu1 }
 0x114   :  { %953 = vst.msk [vmem:[#allocation7 + $0x54] sm:$0xf] %vm931_vm1, %v1165_v52  ;;  %v1170_v58 = vpack.c.bf16 %v525_v54, %v525_v54  ;;  %v1202_v59 = vpack.c.bf16 %v653_v55, %v653_v55  ;;  %v517_v60 = vadd.f32 %v1495_v33, %v516_v56  ;;  %v645_v61 = vadd.f32 %v1495_v33, %v644_v57 }
 0x115   :  { %985 = vst.msk [vmem:[#allocation7 + $0xd4] sm:$0xf] %vm931_vm1, %v1197_v53  ;;  %v1270_v62 = vpop.f32.mrf.mxu0  ;;  %v1302_v63 = vpop.f32.mrf.mxu1 }
 0x116   :  { %958 = vst.msk [vmem:[#allocation7 + $0x68] sm:$0xf] %vm931_vm1, %v1170_v58  ;;  %990 = vst.msk [vmem:[#allocation7 + $0xe8] sm:$0xf] %vm931_vm1, %v1202_v59  ;;  %v1168_v0 = vpack.c.bf16 %v517_v60, %v517_v60  ;;  %v1200_v1 = vpack.c.bf16 %v645_v61, %v645_v61  ;;  %v528_v2 = vadd.f32 %v1270_v62, %v1495_v33 }
 0x117   :  { %v656_v3 = vadd.f32 %v1302_v63, %v1495_v33  ;;  %v519_v4 = vpop.f32.mrf.mxu0  ;;  %v647_v5 = vpop.f32.mrf.mxu1 }
 0x118   :  { %956 = vst.msk [vmem:[#allocation7 + $0x60] sm:$0xf] %vm931_vm1, %v1168_v0  ;;  %988 = vst.msk [vmem:[#allocation7 + $0xe0] sm:$0xf] %vm931_vm1, %v1200_v1  ;;  %v1171_v6 = vpack.c.bf16 %v528_v2, %v528_v2  ;;  %v520_v8 = vadd.f32 %v1495_v33, %v519_v4  ;;  %v648_v9 = vadd.f32 %v1495_v33, %v647_v5 }
 0x119   :  { %v1203_v7 = vpack.c.bf16 %v656_v3, %v656_v3  ;;  %v1273_v10 = vpop.f32.mrf.mxu0  ;;  %v1305_v11 = vpop.f32.mrf.mxu1 }
 0x11a   :  { %959 = vst.msk [vmem:[#allocation7 + $0x6c] sm:$0xf] %vm931_vm1, %v1171_v6  ;;  %v1169_v12 = vpack.c.bf16 %v520_v8, %v520_v8  ;;  %v1201_v13 = vpack.c.bf16 %v648_v9, %v648_v9  ;;  %v541_v14 = vadd.f32 %v1273_v10, %v1495_v33  ;;  %v669_v15 = vadd.f32 %v1305_v11, %v1495_v33 }
 0x11b   :  { %991 = vst.msk [vmem:[#allocation7 + $0xec] sm:$0xf] %vm931_vm1, %v1203_v7  ;;  %v532_v16 = vpop.f32.mrf.mxu0  ;;  %v660_v17 = vpop.f32.mrf.mxu1 }
 0x11c   :  { %957 = vst.msk [vmem:[#allocation7 + $0x64] sm:$0xf] %vm931_vm1, %v1169_v12  ;;  %989 = vst.msk [vmem:[#allocation7 + $0xe4] sm:$0xf] %vm931_vm1, %v1201_v13  ;;  %v1174_v18 = vpack.c.bf16 %v541_v14, %v541_v14  ;;  %v1206_v19 = vpack.c.bf16 %v669_v15, %v669_v15  ;;  %v533_v20 = vadd.f32 %v1495_v33, %v532_v16 }
 0x11d   :  { %v661_v21 = vadd.f32 %v1495_v33, %v660_v17  ;;  %v1274_v22 = vpop.f32.mrf.mxu0  ;;  %v1306_v23 = vpop.f32.mrf.mxu1 }
 0x11e   :  { %962 = vst.msk [vmem:[#allocation7 + $0x78] sm:$0xf] %vm931_vm1, %v1174_v18  ;;  %994 = vst.msk [vmem:[#allocation7 + $0xf8] sm:$0xf] %vm931_vm1, %v1206_v19  ;;  %v1172_v24 = vpack.c.bf16 %v533_v20, %v533_v20  ;;  %v544_v26 = vadd.f32 %v1274_v22, %v1495_v33  ;;  %v672_v27 = vadd.f32 %v1306_v23, %v1495_v33 }
 0x11f   :  { %v1204_v25 = vpack.c.bf16 %v661_v21, %v661_v21  ;;  %v535_v28 = vpop.f32.mrf.mxu0  ;;  %v663_v29 = vpop.f32.mrf.mxu1 }
 0x120   :  { %960 = vst.msk [vmem:[#allocation7 + $0x70] sm:$0xf] %vm931_vm1, %v1172_v24  ;;  %v1175_v30 = vpack.c.bf16 %v544_v26, %v544_v26  ;;  %v1207_v31 = vpack.c.bf16 %v672_v27, %v672_v27  ;;  %v536_v32 = vadd.f32 %v1495_v33, %v535_v28  ;;  %v664_v34 = vadd.f32 %v1495_v33, %v663_v29 }
 0x121   :  { %992 = vst.msk [vmem:[#allocation7 + $0xf0] sm:$0xf] %vm931_vm1, %v1204_v25 }
 0x122   :  { %963 = vst.msk [vmem:[#allocation7 + $0x7c] sm:$0xf] %vm931_vm1, %v1175_v30  ;;  %995 = vst.msk [vmem:[#allocation7 + $0xfc] sm:$0xf] %vm931_vm1, %v1207_v31  ;;  %v1173_v35 = vpack.c.bf16 %v536_v32, %v536_v32  ;;  %v1205_v36 = vpack.c.bf16 %v664_v34, %v664_v34 }
 0x124   :  { %961 = vst.msk [vmem:[#allocation7 + $0x74] sm:$0xf] %vm931_vm1, %v1173_v35  ;;  %993 = vst.msk [vmem:[#allocation7 + $0xf4] sm:$0xf] %vm931_vm1, %v1205_v36 }
 0x125   :  { %1398 = shalt.err (!%p1395_p0)
}
 0x126   :  { %1007 = dma.vmem_to_hbm [thread:$0]  %s1002_s28, 4096, %s1636_s5, [#allocation4], %s1414_s3, %s1414_s3, %s1415_s21  }
 0x127   :  { %1411 = dma.done.wait [#allocation4], 4096  }
 0x128   :  { %1412 = vsyncadd [#allocation4], 4294963200 }
 0x129   :  { %1011 = vsyncpa [#allocation3], 1 }
 0x12a   :  { %1012 = vsyncpa [#allocation6], 1 }
 0x12b   :  { %1013 = vsyncpa [#allocation4], 1 }

</bundles_post_ra>
